<compile_context>
chip_gen: v7x
topology: tpu7x:2x2x1
jax: 0.10.0
libtpu: 0.0.40
codegen_flags: <defaults>
</compile_context>

<pallas_src>
import jax
import jax.numpy as jnp
from jax.experimental import pallas as pl
from jax.experimental.pallas import tpu as pltpu

H1, H2, H3 = 256, 256, 128
_LANE = 128
_SMALL_BATCH = 256                   # below this, don't bother splitting the grid
_VMEM_BUDGET = 40 * 1024 * 1024      # per-step working-set budget (v7x: 64 MiB phys)
_VMEM_LIMIT = 48 * 1024 * 1024       # scoped-VMEM limit passed to Mosaic


def _round_up(x, m):
    return ((x + m - 1) // m) * m


def dqn_kernel(x_ref, w1_ref, b1_ref, w2_ref, b2_ref,
               w3_ref, b3_ref, w4_ref, b4_ref, out_ref):
    """4 MXU matmuls with bf16 operands and f32 accumulation.

    Bias-add + ReLU epilogues run in the bias dtype (bf16 on v6e/v7x, f32 on v5e);
    hidden activations feed the next matmul as bf16.
    """
    def hidden(acc_f32, b_ref):
        h = acc_f32.astype(b_ref.dtype) + b_ref[...]
        return jnp.maximum(h, 0.0).astype(jnp.bfloat16)

    h = hidden(jnp.dot(x_ref[...], w1_ref[...],
                       preferred_element_type=jnp.float32), b1_ref)
    h = hidden(jnp.dot(h, w2_ref[...],
                       preferred_element_type=jnp.float32), b2_ref)
    h = hidden(jnp.dot(h, w3_ref[...],
                       preferred_element_type=jnp.float32), b3_ref)
    acc = jnp.dot(h, w4_ref[...], preferred_element_type=jnp.float32)
    out_ref[...] = (acc + b4_ref[...]).astype(out_ref.dtype)


def default_epilogue_dtype():
    """bf16 epilogue where the VPU has a bf16 path (v6e/v7x); f32 on v5e/older."""
    try:
        kind = jax.devices()[0].device_kind.lower()
    except Exception:
        kind = ""
    if any(t in kind for t in ("v2", "v3", "v4", "v5")):
        return jnp.float32
    return jnp.bfloat16


def prepare_dqn_params(params, *, epilogue_dtype=None):
    """One-time conversion of PyTorch-layout (out_features, in_features) params.

    Returns (flat_args, action_size, n_out_pad): weights transposed to (in, out)
    bf16, hidden biases (1, N) in epilogue dtype, and layer-4 weight/bias
    zero-padded to a lane-dense 128-wide output.
    """
    if epilogue_dtype is None:
        epilogue_dtype = default_epilogue_dtype()
    (w1, b1), (w2, b2), (w3, b3), (w4, b4) = params
    action_size = w4.shape[0]
    n_out_pad = max(_LANE, _round_up(action_size, _LANE))

    w4t = jnp.zeros((w4.shape[1], n_out_pad), jnp.bfloat16)
    w4t = w4t.at[:, :action_size].set(w4.T.astype(jnp.bfloat16))
    b4p = jnp.zeros((1, n_out_pad), jnp.float32)
    b4p = b4p.at[:, :action_size].set(b4.reshape(1, -1).astype(jnp.float32))

    flat = (
        w1.T.astype(jnp.bfloat16), b1.reshape(1, -1).astype(epilogue_dtype),
        w2.T.astype(jnp.bfloat16), b2.reshape(1, -1).astype(epilogue_dtype),
        w3.T.astype(jnp.bfloat16), b3.reshape(1, -1).astype(epilogue_dtype),
        w4t, b4p,
    )
    return flat, action_size, n_out_pad


def _choose_tile(B, d_in, n_out_pad, weight_bytes, batch_tile):
    batch_tile = max(8, _round_up(batch_tile, 8))
    if B <= _SMALL_BATCH:
        tb = B                                    # single full-batch block, no padding
    else:
        # Keep >= 2 grid steps so the batch axis can shard across both v7x TCs.
        tb = min(batch_tile, _round_up(pl.cdiv(B, 2), 8))

    def vmem_est(t):
        x_tile = t * d_in * 2 * 2                 # bf16 x, double-buffered
        o_tile = t * n_out_pad * 4 * 2            # f32 out, double-buffered
        acts = t * H1 * 4 * 3                     # live intermediates (headroom)
        return x_tile + o_tile + acts + 2 * weight_bytes

    while tb > 64 and vmem_est(tb) > _VMEM_BUDGET:
        tb = max(64, _round_up(tb // 2, 8))
    return tb


def dqn_forward(x, prepared, *, batch_tile=1024):
    """x: (B, ...) flattened from dim 1 (torch.flatten(x, 1) semantics).

    prepared: output of prepare_dqn_params (cached across calls).
    """
    flat_args, action_size, n_out_pad = prepared
    B = x.shape[0]
    # Cast to bf16 BEFORE padding so the pad moves half the bytes.
    x2d = x.reshape(B, -1).astype(jnp.bfloat16)
    d_in = x2d.shape[1]

    weight_bytes = sum(a.size * a.dtype.itemsize for a in flat_args)
    TB = _choose_tile(B, d_in, n_out_pad, weight_bytes, batch_tile)
    B_pad = _round_up(B, TB)
    if B_pad != B:
        x2d = jnp.pad(x2d, ((0, B_pad - B), (0, 0)))
    grid = (B_pad // TB,)

    def resident_spec(shape):
        # Same block every grid step -> stays resident in VMEM across the loop.
        return pl.BlockSpec(shape, lambda i: (0, 0))

    in_specs = [pl.BlockSpec((TB, d_in), lambda i: (i, 0))]        # x: batch-tiled
    in_specs += [resident_spec(a.shape) for a in flat_args]         # weights/biases
    out_spec = pl.BlockSpec((TB, n_out_pad), lambda i: (i, 0))      # lane-dense out

    flops = 2 * B_pad * (d_in * H1 + H1 * H2 + H2 * H3 + H3 * n_out_pad)
    bytes_accessed = (x2d.size * x2d.dtype.itemsize + weight_bytes
                      + B_pad * n_out_pad * 4)

    out = pl.pallas_call(
        dqn_kernel,
        out_shape=jax.ShapeDtypeStruct((B_pad, n_out_pad), jnp.float32),
        grid=grid,
        in_specs=in_specs,
        out_specs=out_spec,
        compiler_params=pltpu.CompilerParams(
            dimension_semantics=("parallel",),      # shard batch axis over TCs (v7x)
            vmem_limit_bytes=_VMEM_LIMIT),
        cost_estimate=pl.CostEstimate(
            flops=flops, transcendentals=0, bytes_accessed=bytes_accessed),
    )(x2d, *flat_args)

    return out[:B, :action_size]


def init_dqn_params(key, input_shape, action_size):
    """Deterministic init mimicking PyTorch nn.Linear default U(-1/sqrt(fan_in), +)."""
    dims = [(input_shape, H1), (H1, H2), (H2, H3), (H3, action_size)]
    params = []
    for fan_in, fan_out in dims:
        key, kw, kb = jax.random.split(key, 3)
        bound = 1.0 / (fan_in ** 0.5)
        w = jax.random.uniform(kw, (fan_out, fan_in), jnp.float32, -bound, bound)
        b = jax.random.uniform(kb, (fan_out,), jnp.float32, -bound, bound)
        params.append((w, b))
    return params


def _reference(x, params, *, mirror_kernel, epilogue_dtype=jnp.bfloat16):
    """Plain-JAX forward.  mirror_kernel=True mimics the kernel's numerics."""
    h = x.reshape(x.shape[0], -1).astype(jnp.float32)
    for i, (w, b) in enumerate(params):
        if mirror_kernel:
            acc = jnp.dot(h.astype(jnp.bfloat16), w.T.astype(jnp.bfloat16),
                          preferred_element_type=jnp.float32)
            if i < 3:
                hb = acc.astype(epilogue_dtype) + b.astype(epilogue_dtype)
                h = jnp.maximum(hb, 0.0).astype(jnp.float32)
            else:
                h = acc + b
        else:
            h = h @ w.T + b
            if i < 3:
                h = jnp.maximum(h, 0.0)
    return h


if __name__ == "__main__":
    key = jax.random.PRNGKey(0)
    key, kx = jax.random.split(key)

    # Small shapes: batch=2, input flattens to 4*8 = 32 features, 4 actions.
    batch, input_shape, action_size = 2, 32, 4
    x = jax.random.normal(kx, (batch, 4, 8), jnp.float32)   # flatten(x,1) -> (2, 32)

    params = init_dqn_params(key, input_shape, action_size)
    epi_dtype = default_epilogue_dtype()
    prepared = prepare_dqn_params(params, epilogue_dtype=epi_dtype)  # prepared once

    out = dqn_forward(x, prepared)
    jax.block_until_ready(out)
    assert out.shape == (batch, action_size)

    # Check vs a reference mirroring the kernel numerics, then loosely vs full f32.
    ref_mirror = _reference(x, params, mirror_kernel=True, epilogue_dtype=epi_dtype)
    assert jnp.allclose(out, ref_mirror, atol=2e-2, rtol=2e-2)
    ref_f32 = _reference(x, params, mirror_kernel=False)
    assert jnp.allclose(out, ref_f32, atol=1e-1, rtol=1e-1)

    # Exercise the multi-step (tiled + padded, >=2 grid steps) path too.
    key, kx2 = jax.random.split(key)
    x_big = jax.random.normal(kx2, (1030, 4, 8), jnp.float32)
    out_big = dqn_forward(x_big, prepared, batch_tile=1024)
    jax.block_until_ready(out_big)
    assert out_big.shape == (1030, action_size)
    ref_big = _reference(x_big, params, mirror_kernel=True, epilogue_dtype=epi_dtype)
    assert jnp.allclose(out_big, ref_big, atol=2e-2, rtol=2e-2)

    print("KERNEL_OK")
</pallas_src>

<mosaic_0001>
module attributes {stable_mosaic.version = 11 : i64} {
  func.func @dqn_kernel(%arg0: i32, %arg1: memref<2x32xbf16, #tpu.memory_space<vmem>>, %arg2: memref<32x256xbf16, #tpu.memory_space<vmem>>, %arg3: memref<1x256xbf16, #tpu.memory_space<vmem>>, %arg4: memref<256x256xbf16, #tpu.memory_space<vmem>>, %arg5: memref<1x256xbf16, #tpu.memory_space<vmem>>, %arg6: memref<256x128xbf16, #tpu.memory_space<vmem>>, %arg7: memref<1x128xbf16, #tpu.memory_space<vmem>>, %arg8: memref<128x128xbf16, #tpu.memory_space<vmem>>, %arg9: memref<1x128xf32, #tpu.memory_space<vmem>>, %arg10: memref<2x128xf32, #tpu.memory_space<vmem>>) attributes {dimension_semantics = [#tpu.dimension_semantics<parallel>], iteration_bounds = array<i64: 1>, scalar_prefetch = 0 : i64, scratch_operands = 0 : i64, tpu.core_type = #tpu.core_type<tc>, window_params = [{transform_indices = @transform_0, window_bounds = array<i64: 2, 32>}, {pipeline_mode = #tpu.pipeline_mode<synchronous>, transform_indices = @transform_1, window_bounds = array<i64: 32, 256>}, {pipeline_mode = #tpu.pipeline_mode<synchronous>, transform_indices = @transform_2, window_bounds = array<i64: 1, 256>}, {pipeline_mode = #tpu.pipeline_mode<synchronous>, transform_indices = @transform_3, window_bounds = array<i64: 256, 256>}, {pipeline_mode = #tpu.pipeline_mode<synchronous>, transform_indices = @transform_4, window_bounds = array<i64: 1, 256>}, {pipeline_mode = #tpu.pipeline_mode<synchronous>, transform_indices = @transform_5, window_bounds = array<i64: 256, 128>}, {pipeline_mode = #tpu.pipeline_mode<synchronous>, transform_indices = @transform_6, window_bounds = array<i64: 1, 128>}, {pipeline_mode = #tpu.pipeline_mode<synchronous>, transform_indices = @transform_7, window_bounds = array<i64: 128, 128>}, {pipeline_mode = #tpu.pipeline_mode<synchronous>, transform_indices = @transform_8, window_bounds = array<i64: 1, 128>}, {transform_indices = @transform_9, window_bounds = array<i64: 2, 128>}]} {
    %c0 = arith.constant 0 : index
    %c0_0 = arith.constant 0 : index
    %0 = vector.load %arg1[%c0, %c0_0] : memref<2x32xbf16, #tpu.memory_space<vmem>>, vector<2x32xbf16>
    %c0_1 = arith.constant 0 : index
    %c0_2 = arith.constant 0 : index
    %1 = vector.load %arg2[%c0_1, %c0_2] : memref<32x256xbf16, #tpu.memory_space<vmem>>, vector<32x256xbf16>
    %cst = arith.constant dense<0.000000e+00> : vector<2x256xf32>
    %2 = tpu.matmul %0, %1, %cst {dimension_numbers = #tpu.dot_dimension_numbers<[1], [0], [0], [1], [0, 0, 1, 1], [], []>} : vector<2x32xbf16>, vector<32x256xbf16>, vector<2x256xf32> -> vector<2x256xf32>
    %3 = arith.truncf %2 : vector<2x256xf32> to vector<2x256xbf16>
    %c0_3 = arith.constant 0 : index
    %c0_4 = arith.constant 0 : index
    %4 = vector.load %arg3[%c0_3, %c0_4] : memref<1x256xbf16, #tpu.memory_space<vmem>>, vector<1x256xbf16>
    %5 = vector.broadcast %4 : vector<1x256xbf16> to vector<2x256xbf16>
    %6 = arith.addf %3, %5 : vector<2x256xbf16>
    %cst_5 = arith.constant 0.000000e+00 : bf16
    %7 = vector.broadcast %cst_5 : bf16 to vector<2x256xbf16>
    %8 = arith.maximumf %6, %7 : vector<2x256xbf16>
    %c0_6 = arith.constant 0 : index
    %c0_7 = arith.constant 0 : index
    %9 = vector.load %arg4[%c0_6, %c0_7] : memref<256x256xbf16, #tpu.memory_space<vmem>>, vector<256x256xbf16>
    %cst_8 = arith.constant dense<0.000000e+00> : vector<2x256xf32>
    %10 = tpu.matmul %8, %9, %cst_8 {dimension_numbers = #tpu.dot_dimension_numbers<[1], [0], [0], [1], [0, 0, 1, 1], [], []>} : vector<2x256xbf16>, vector<256x256xbf16>, vector<2x256xf32> -> vector<2x256xf32>
    %11 = arith.truncf %10 : vector<2x256xf32> to vector<2x256xbf16>
    %c0_9 = arith.constant 0 : index
    %c0_10 = arith.constant 0 : index
    %12 = vector.load %arg5[%c0_9, %c0_10] : memref<1x256xbf16, #tpu.memory_space<vmem>>, vector<1x256xbf16>
    %13 = vector.broadcast %12 : vector<1x256xbf16> to vector<2x256xbf16>
    %14 = arith.addf %11, %13 : vector<2x256xbf16>
    %cst_11 = arith.constant 0.000000e+00 : bf16
    %15 = vector.broadcast %cst_11 : bf16 to vector<2x256xbf16>
    %16 = arith.maximumf %14, %15 : vector<2x256xbf16>
    %c0_12 = arith.constant 0 : index
    %c0_13 = arith.constant 0 : index
    %17 = vector.load %arg6[%c0_12, %c0_13] : memref<256x128xbf16, #tpu.memory_space<vmem>>, vector<256x128xbf16>
    %cst_14 = arith.constant dense<0.000000e+00> : vector<2x128xf32>
    %18 = tpu.matmul %16, %17, %cst_14 {dimension_numbers = #tpu.dot_dimension_numbers<[1], [0], [0], [1], [0, 0, 1, 1], [], []>} : vector<2x256xbf16>, vector<256x128xbf16>, vector<2x128xf32> -> vector<2x128xf32>
    %19 = arith.truncf %18 : vector<2x128xf32> to vector<2x128xbf16>
    %c0_15 = arith.constant 0 : index
    %c0_16 = arith.constant 0 : index
    %20 = vector.load %arg7[%c0_15, %c0_16] : memref<1x128xbf16, #tpu.memory_space<vmem>>, vector<1x128xbf16>
    %21 = vector.broadcast %20 : vector<1x128xbf16> to vector<2x128xbf16>
    %22 = arith.addf %19, %21 : vector<2x128xbf16>
    %cst_17 = arith.constant 0.000000e+00 : bf16
    %23 = vector.broadcast %cst_17 : bf16 to vector<2x128xbf16>
    %24 = arith.maximumf %22, %23 : vector<2x128xbf16>
    %c0_18 = arith.constant 0 : index
    %c0_19 = arith.constant 0 : index
    %25 = vector.load %arg8[%c0_18, %c0_19] : memref<128x128xbf16, #tpu.memory_space<vmem>>, vector<128x128xbf16>
    %cst_20 = arith.constant dense<0.000000e+00> : vector<2x128xf32>
    %26 = tpu.matmul %24, %25, %cst_20 {dimension_numbers = #tpu.dot_dimension_numbers<[1], [0], [0], [1], [0, 0, 1, 1], [], []>} : vector<2x128xbf16>, vector<128x128xbf16>, vector<2x128xf32> -> vector<2x128xf32>
    %c0_21 = arith.constant 0 : index
    %c0_22 = arith.constant 0 : index
    %27 = vector.load %arg9[%c0_21, %c0_22] : memref<1x128xf32, #tpu.memory_space<vmem>>, vector<1x128xf32>
    %28 = vector.broadcast %27 : vector<1x128xf32> to vector<2x128xf32>
    %29 = arith.addf %26, %28 : vector<2x128xf32>
    %c0_23 = arith.constant 0 : index
    %c0_24 = arith.constant 0 : index
    %30 = vector.load %arg10[%c0_23, %c0_24] : memref<2x128xf32, #tpu.memory_space<vmem>>, vector<2x128xf32>
    tpu.vector_store %arg10[%c0_23, %c0_24], %29 {strides = array<i32>} : memref<2x128xf32, #tpu.memory_space<vmem>>, vector<2x128xf32>,
    return
  }
  func.func @transform_0(%arg0: i32) -> (i32, i32) {
    %c0_i32 = arith.constant 0 : i32
    %c0_i32_0 = arith.constant 0 : i32
    return %arg0, %c0_i32 : i32, i32
  }
  func.func @transform_1(%arg0: i32) -> (i32, i32) {
    %c0_i32 = arith.constant 0 : i32
    %c0_i32_0 = arith.constant 0 : i32
    %c0_i32_1 = arith.constant 0 : i32
    return %c0_i32, %c0_i32_0 : i32, i32
  }
  func.func @transform_2(%arg0: i32) -> (i32, i32) {
    %c0_i32 = arith.constant 0 : i32
    %c0_i32_0 = arith.constant 0 : i32
    %c0_i32_1 = arith.constant 0 : i32
    return %c0_i32, %c0_i32_0 : i32, i32
  }
  func.func @transform_3(%arg0: i32) -> (i32, i32) {
    %c0_i32 = arith.constant 0 : i32
    %c0_i32_0 = arith.constant 0 : i32
    %c0_i32_1 = arith.constant 0 : i32
    return %c0_i32, %c0_i32_0 : i32, i32
  }
  func.func @transform_4(%arg0: i32) -> (i32, i32) {
    %c0_i32 = arith.constant 0 : i32
    %c0_i32_0 = arith.constant 0 : i32
    %c0_i32_1 = arith.constant 0 : i32
    return %c0_i32, %c0_i32_0 : i32, i32
  }
  func.func @transform_5(%arg0: i32) -> (i32, i32) {
    %c0_i32 = arith.constant 0 : i32
    %c0_i32_0 = arith.constant 0 : i32
    %c0_i32_1 = arith.constant 0 : i32
    return %c0_i32, %c0_i32_0 : i32, i32
  }
  func.func @transform_6(%arg0: i32) -> (i32, i32) {
    %c0_i32 = arith.constant 0 : i32
    %c0_i32_0 = arith.constant 0 : i32
    %c0_i32_1 = arith.constant 0 : i32
    return %c0_i32, %c0_i32_0 : i32, i32
  }
  func.func @transform_7(%arg0: i32) -> (i32, i32) {
    %c0_i32 = arith.constant 0 : i32
    %c0_i32_0 = arith.constant 0 : i32
    %c0_i32_1 = arith.constant 0 : i32
    return %c0_i32, %c0_i32_0 : i32, i32
  }
  func.func @transform_8(%arg0: i32) -> (i32, i32) {
    %c0_i32 = arith.constant 0 : i32
    %c0_i32_0 = arith.constant 0 : i32
    %c0_i32_1 = arith.constant 0 : i32
    return %c0_i32, %c0_i32_0 : i32, i32
  }
  func.func @transform_9(%arg0: i32) -> (i32, i32) {
    %c0_i32 = arith.constant 0 : i32
    %c0_i32_0 = arith.constant 0 : i32
    return %arg0, %c0_i32 : i32, i32
  }
}

</mosaic_0001>

<bundles_post_ra>
// kernel: tpu_custom_call.1
= control target key start
LH: loop header
LB: loop body
LE: loop exit
PB: predicated region body
PF: predicated region fallthrough
CT: control target
= control target key end

     0   :  { %14 = vsyncpa [#allocation3], 0  ;;  %s1326_s0 = inlined_call_operand.hbm [shape: bf16[2,32], index: 0, kind: input, shape index: {}]   ;;  %s1327_s1 = inlined_call_operand.hbm [shape: bf16[32,256], index: 1, kind: input, shape index: {}]   ;;  %s1328_s2 = inlined_call_operand.vmem [shape: bf16[1,256], index: 2, kind: input, shape index: {}]   ;;  %s1329_s3 = inlined_call_operand.hbm [shape: bf16[256,256], index: 3, kind: input, shape index: {}]   ;;  %s1330_s4 = inlined_call_operand.vmem [shape: bf16[1,256], index: 4, kind: input, shape index: {}]   ;;  %s1331_s5 = inlined_call_operand.hbm [shape: bf16[256,128], index: 5, kind: input, shape index: {}]   ;;  %s1332_s6 = inlined_call_operand.vmem [shape: bf16[1,128], index: 6, kind: input, shape index: {}]   ;;  %s1333_s7 = inlined_call_operand.hbm [shape: bf16[128,128], index: 7, kind: input, shape index: {}]   ;;  %s1334_s8 = inlined_call_operand.vmem [shape: f32[1,128], index: 8, kind: input, shape index: {}]   ;;  %s1335_s9 = inlined_call_operand.hbm [shape: f32[2,128], index: 9, kind: output, shape index: {}]  }
   0x1   :  { %15 = vsyncpa [#allocation6], 0 }
   0x2   :  { %16 = vsyncpa [#allocation9], 0 }
   0x3   :  { %17 = vsyncpa [#allocation4], 0  ;;  %s1146_s30 = smov [#allocation5]   ;;  %s1006_s13 = scalar_lea.hbm %s1327_s1, 512 }
   0x4   :  { %s33_s10 = sshll.u32 %s1146_s30, 4  ;;  %p1007_p0 = scmp.ne.s32.totalorder %s1327_s1, %s1006_s13  ;;  %s34_s10 = int_to_ptr.vmem [resolvable:$true] %s33_s10 }
   0x5   :  { %p1010_p1 = scmp.lt.u32.totalorder %s1006_s13, %s1327_s1 }
   0x7   :  { %p1012_p2 = pnand %p1010_p1, %p1007_p0 }
   0x9   :  { %1015 = shalt.err (!%p1012_p2)
}
   0xa   :  { %s1016_s18 = scalar_lea.vmem %s34_s10, 512  ;;  %p1021_p4 = scmp.lt.s32.totalorder %s34_s10, %s34_s10 }
   0xb   :  { %p1017_p3 = scmp.ne.s32.totalorder %s34_s10, %s1016_s18  ;;  %p1022_p5 = scmp.lt.s32.totalorder %s1016_s18, %s1016_s18 }
   0xd   :  { %p1023_p6 = por %p1022_p5, %p1021_p4 }
   0xf   :  { %p1024_p7 = pnand %p1023_p6, %p1017_p3 }
  0x11   :  { %1027 = shalt.err (!%p1024_p7)
}
  0x12   :  { %s1147_s19 = smov 128   ;;  %s1148_s20 = smov 8  }
  0x13   :  { %39 = dma.hbm_to_vmem [thread:$0]  %s1327_s1, 512, %s34_s10, [#allocation6], %s1147_s19, %s1147_s19, %s1148_s20  }
  0x14   :  { %s1149_s23 = smov [#allocation8]   ;;  %s1028_s27 = scalar_lea.hbm %s1331_s5, 2048 }
  0x15   :  { %s61_s24 = sshll.u32 %s1149_s23, 4  ;;  %p1029_p8 = scmp.ne.s32.totalorder %s1331_s5, %s1028_s27  ;;  %s62_s24 = int_to_ptr.vmem [resolvable:$true] %s61_s24 }
  0x16   :  { %p1032_p9 = scmp.lt.u32.totalorder %s1028_s27, %s1331_s5 }
  0x18   :  { %p1034_p10 = pnand %p1032_p9, %p1029_p8 }
  0x1a   :  { %1037 = shalt.err (!%p1034_p10)
}
  0x1b   :  { %s1038_s12 = scalar_lea.vmem %s62_s24, 2048  ;;  %p1043_p12 = scmp.lt.s32.totalorder %s62_s24, %s62_s24 }
  0x1c   :  { %p1039_p11 = scmp.ne.s32.totalorder %s62_s24, %s1038_s12  ;;  %p1044_p13 = scmp.lt.s32.totalorder %s1038_s12, %s1038_s12 }
  0x1e   :  { %p1045_p0 = por %p1044_p13, %p1043_p12 }
  0x20   :  { %p1046_p1 = pnand %p1045_p0, %p1039_p11 }
  0x22   :  { %1049 = shalt.err (!%p1046_p1)
}
  0x23   :  { %s1150_s1 = smov 64   ;;  %s1151_s10 = smov 4  }
  0x24   :  { %67 = dma.hbm_to_vmem [thread:$0]  %s1331_s5, 2048, %s62_s24, [#allocation9], %s1150_s1, %s1150_s1, %s1151_s10  }
  0x25   :  { %s1152_s15 = smov [#allocation2]   ;;  %s1153_s17 = smov [#allocation7]  }
  0x26   :  { %s24_s16 = sshll.u32 %s1152_s15, 4  ;;  %s47_s18 = sshll.u32 %s1153_s17, 4  ;;  %s25_s16 = int_to_ptr.vmem [resolvable:$true] %s24_s16  ;;  %s1240_s18 = int_to_ptr.vmem [resolvable:$true] %s47_s18 }
  0x27   :  { %s1050_s23 = scalar_lea.hbm %s1326_s0, 16 }
  0x28   :  { %p1051_p2 = scmp.ne.s32.totalorder %s1326_s0, %s1050_s23  ;;  %p1054_p3 = scmp.lt.u32.totalorder %s1050_s23, %s1326_s0 }
  0x2a   :  { %p1056_p4 = pnand %p1054_p3, %p1051_p2 }
  0x2c   :  { %1059 = shalt.err (!%p1056_p4)
}
  0x2d   :  { %s1060_s5 = scalar_lea.vmem %s25_s16, 16  ;;  %s1064_s24 = scalar_lea.vmem %s25_s16, 32 }
  0x2e   :  { %p1061_p5 = scmp.ne.s32.totalorder %s25_s16, %s1060_s5  ;;  %p1065_p6 = scmp.lt.s32.totalorder %s25_s16, %s25_s16 }
  0x2f   :  { %p1066_p7 = scmp.lt.s32.totalorder %s1064_s24, %s1060_s5 }
  0x31   :  { %p1067_p8 = por %p1066_p7, %p1065_p6 }
  0x33   :  { %p1068_p9 = pnand %p1067_p8, %p1061_p5 }
  0x35   :  { %1071 = shalt.err (!%p1068_p9)
}
  0x36   :  { %27 = dma.hbm_to_vmem [thread:$0]  %s1326_s0, 16, %s25_s16, [#allocation3]  }
  0x37   :  { %s1072_s13 = scalar_lea.hbm %s1329_s3, 4096 }
  0x38   :  { %p1073_p10 = scmp.ne.s32.totalorder %s1329_s3, %s1072_s13  ;;  %p1076_p11 = scmp.lt.u32.totalorder %s1072_s13, %s1329_s3 }
  0x3a   :  { %p1078_p12 = pnand %p1076_p11, %p1073_p10 }
  0x3c   :  { %1081 = shalt.err (!%p1078_p12)
}
  0x3d   :  { %s1082_s22 = scalar_lea.vmem %s1240_s18, 4096  ;;  %p1087_p0 = scmp.lt.s32.totalorder %s1240_s18, %s1240_s18 }
  0x3e   :  { %p1083_p13 = scmp.ne.s32.totalorder %s1240_s18, %s1082_s22  ;;  %p1088_p1 = scmp.lt.s32.totalorder %s1082_s22, %s1082_s22 }
  0x40   :  { %p1089_p2 = por %p1088_p1, %p1087_p0 }
  0x42   :  { %p1090_p3 = pnand %p1089_p2, %p1083_p13 }
  0x44   :  { %1093 = shalt.err (!%p1090_p3)
}
  0x45   :  { %53 = dma.hbm_to_vmem [thread:$0]  %s1329_s3, 4096, %s1240_s18, [#allocation6], %s1147_s19, %s1147_s19, %s1148_s20  }
  0x46   :  { %s1154_s23 = smov [#allocation10]   ;;  %s1094_s28 = scalar_lea.hbm %s1333_s7, 1024 }
  0x47   :  { %s75_s25 = sshll.u32 %s1154_s23, 4  ;;  %p1095_p4 = scmp.ne.s32.totalorder %s1333_s7, %s1094_s28  ;;  %s76_s25 = int_to_ptr.vmem [resolvable:$true] %s75_s25 }
  0x48   :  { %p1098_p5 = scmp.lt.u32.totalorder %s1094_s28, %s1333_s7 }
  0x4a   :  { %p1100_p6 = pnand %p1098_p5, %p1095_p4 }
  0x4c   :  { %1103 = shalt.err (!%p1100_p6)
}
  0x4d   :  { %s1104_s11 = scalar_lea.vmem %s76_s25, 1024  ;;  %p1109_p8 = scmp.lt.s32.totalorder %s76_s25, %s76_s25 }
  0x4e   :  { %p1105_p7 = scmp.ne.s32.totalorder %s76_s25, %s1104_s11  ;;  %p1110_p9 = scmp.lt.s32.totalorder %s1104_s11, %s1104_s11 }
  0x50   :  { %p1111_p10 = por %p1110_p9, %p1109_p8 }
  0x52   :  { %p1112_p11 = pnand %p1111_p10, %p1105_p7 }
  0x54   :  { %1115 = shalt.err (!%p1112_p11)
}
  0x55   :  { %81 = dma.hbm_to_vmem [thread:$0]  %s1333_s7, 1024, %s76_s25, [#allocation9], %s1150_s1, %s1150_s1, %s1151_s10  }
  0x56   :  { %1138 = dma.done.wait [#allocation3], 16  }
  0x57   :  { %1139 = vsyncadd [#allocation3], 4294967280 }
  0x58   :  { %1140 = dma.done.wait [#allocation6], 4608  }
  0x59   :  { %1141 = vsyncadd [#allocation6], 4294962688 }
  0x5a   :  { %1142 = dma.done.wait [#allocation9], 3072  }
  0x5b   :  { %1143 = vsyncadd [#allocation9], 4294964224  ;;  %v1155_v0 = vmov 0   ;;  %v928_v1 = vld [vmem:[#allocation5 + $0x4] ss:$8 sps:$4 sm:$0xff]   ;;  %vm125_vm0 = vcmask 261120   ;;  %v185_v52 = vlaneseq }
  0x5c   :  { %161 = vmatprep.mubr.bf16.mxu0 %v1155_v0  ;;  %v930_v2 = vld [vmem:[#allocation5] ss:$8 sps:$4 sm:$0xff]   ;;  %129 = vmatprep.subr.bf16.mxu0 %v928_v1  ;;  %v931_v3 = vld [vmem:[#allocation5 + $0x14] ss:$8 sps:$4 sm:$0xff]   ;;  %v933_v4 = vld [vmem:[#allocation5 + $0x10] ss:$8 sps:$4 sm:$0xff]  }
  0x5d   :  { %130 = vmatpush1.bf16.msra.mxu0 %v930_v2  ;;  %v934_v5 = vld [vmem:[#allocation7 + $0x4] ss:$8 sps:$4 sm:$0xff]   ;;  %v936_v6 = vld [vmem:[#allocation7] ss:$8 sps:$4 sm:$0xff]   ;;  %v937_v7 = vld [vmem:[#allocation7 + $0x14] ss:$8 sps:$4 sm:$0xff]  }
  0x5e   :  { %131 = vmatprep.subr.bf16.mxu0 %v931_v3  ;;  %406 = vmatprep.subr.bf16.mxu1 %v934_v5  ;;  %v100_v8 = vld [vmem:[#allocation2] sm:$0x1]  ;;  %v939_v9 = vld [vmem:[#allocation7 + $0x10] ss:$8 sps:$4 sm:$0xff]   ;;  %v940_v10 = vld [vmem:[#allocation7 + $0x24] ss:$8 sps:$4 sm:$0xff]  }
  0x5f   :  { %407 = vmatpush1.bf16.msra.mxu1 %v936_v6  ;;  %v942_v11 = vld [vmem:[#allocation7 + $0x20] ss:$8 sps:$4 sm:$0xff]   ;;  %v943_v12 = vld [vmem:[#allocation7 + $0x34] ss:$8 sps:$4 sm:$0xff]   ;;  %v945_v13 = vld [vmem:[#allocation7 + $0x30] ss:$8 sps:$4 sm:$0xff]  }
  0x60   :  { %408 = vmatprep.subr.bf16.mxu1 %v937_v7  ;;  %v946_v14 = vld [vmem:[#allocation7 + $0x44] ss:$8 sps:$4 sm:$0xff]   ;;  %v948_v15 = vld [vmem:[#allocation7 + $0x40] ss:$8 sps:$4 sm:$0xff]   ;;  %v949_v16 = vld [vmem:[#allocation7 + $0x54] ss:$8 sps:$4 sm:$0xff]  }
  0x61   :  { %132 = vmatpush1.bf16.msra.mxu0 %v933_v4  ;;  %v951_v17 = vld [vmem:[#allocation7 + $0x50] ss:$8 sps:$4 sm:$0xff]   ;;  %v952_v18 = vld [vmem:[#allocation7 + $0x64] ss:$8 sps:$4 sm:$0xff]   ;;  %v954_v19 = vld [vmem:[#allocation7 + $0x60] ss:$8 sps:$4 sm:$0xff]  }
  0x62   :  { %v955_v20 = vld [vmem:[#allocation7 + $0x74] ss:$8 sps:$4 sm:$0xff]   ;;  %v957_v21 = vld [vmem:[#allocation7 + $0x70] ss:$8 sps:$4 sm:$0xff]   ;;  %v958_v22 = vld [vmem:[#allocation7 + $0x84] ss:$8 sps:$4 sm:$0xff]  }
  0x63   :  { %409 = vmatpush1.bf16.msra.mxu1 %v939_v9  ;;  %v960_v23 = vld [vmem:[#allocation7 + $0x80] ss:$8 sps:$4 sm:$0xff]   ;;  %v961_v24 = vld [vmem:[#allocation7 + $0x94] ss:$8 sps:$4 sm:$0xff]   ;;  %v963_v25 = vld [vmem:[#allocation7 + $0x90] ss:$8 sps:$4 sm:$0xff]  }
  0x64   :  { %803 = vmatmul.mubr.msk.bf16.vlgmr.msra.gmra.mrb[0].mxu0 %vm125_vm0, %v100_v8  ;;  %410 = vmatprep.subr.bf16.mxu1 %v940_v10  ;;  %v964_v26 = vld [vmem:[#allocation7 + $0xa4] ss:$8 sps:$4 sm:$0xff]   ;;  %v966_v27 = vld [vmem:[#allocation7 + $0xa0] ss:$8 sps:$4 sm:$0xff]   ;;  %v967_v28 = vld [vmem:[#allocation7 + $0xb4] ss:$8 sps:$4 sm:$0xff]  }
  0x65   :  { %v969_v29 = vld [vmem:[#allocation7 + $0xb0] ss:$8 sps:$4 sm:$0xff]   ;;  %v970_v30 = vld [vmem:[#allocation7 + $0xc4] ss:$8 sps:$4 sm:$0xff]   ;;  %v972_v31 = vld [vmem:[#allocation7 + $0xc0] ss:$8 sps:$4 sm:$0xff]  }
  0x66   :  { %v973_v32 = vld [vmem:[#allocation7 + $0xd4] ss:$8 sps:$4 sm:$0xff]   ;;  %v975_v33 = vld [vmem:[#allocation7 + $0xd0] ss:$8 sps:$4 sm:$0xff]   ;;  %v976_v34 = vld [vmem:[#allocation7 + $0xe4] ss:$8 sps:$4 sm:$0xff]  }
  0x67   :  { %411 = vmatpush1.bf16.msra.mxu1 %v942_v11  ;;  %v978_v35 = vld [vmem:[#allocation7 + $0xe0] ss:$8 sps:$4 sm:$0xff]   ;;  %v979_v36 = vld [vmem:[#allocation7 + $0xf4] ss:$8 sps:$4 sm:$0xff]   ;;  %v981_v37 = vld [vmem:[#allocation7 + $0xf0] ss:$8 sps:$4 sm:$0xff]  }
  0x68   :  { %412 = vmatprep.subr.bf16.mxu1 %v943_v12  ;;  %v982_v38 = vld [vmem:[#allocation8 + $0x40] sm:$0xff]   ;;  %v984_v40 = vld [vmem:[#allocation8 + $0x48] sm:$0xff]   ;;  %v986_v42 = vld [vmem:[#allocation8 + $0x50] sm:$0xff]   ;;  %v1156_v50 = vmov 1966171168   ;;  %v186_v54 = vshrl.u32 %v185_v52, 7 }
  0x69   :  { %v983_v39 = vld [vmem:[#allocation8] sm:$0xff]   ;;  %863 = vmatprep.subr.bf16.mxu0 %v982_v38  ;;  %v985_v41 = vld [vmem:[#allocation8 + $0x8] sm:$0xff]   ;;  %v987_v43 = vld [vmem:[#allocation8 + $0x10] sm:$0xff]   ;;  %v183_v51 = vunpack.c.l.s4 %v1156_v50  ;;  %vm1158_vm1 = vmmov 0   ;;  %s1159_s13 = smov [#allocation11]  }
  0x6a   :  { %864 = vmatpush3.bf16.msra.mxu0 %v983_v39  ;;  %v988_v44 = vld [vmem:[#allocation8 + $0x58] sm:$0xff]   ;;  %v990_v46 = vld [vmem:[#allocation8 + $0x60] sm:$0xff]   ;;  %v992_v48 = vld [vmem:[#allocation8 + $0x68] sm:$0xff]   ;;  %v1293_v61 = vsub.s32 0, %v186_v54  ;;  %s788_s14 = sshll.u32 %s1159_s13, 4  ;;  %s789_s14 = int_to_ptr.vmem [resolvable:$true] %s788_s14 }
  0x6b   :  { %413 = vmatpush1.bf16.msra.mxu1 %v945_v13  ;;  %865 = vmatprep.subr.bf16.mxu0 %v984_v40  ;;  %v989_v45 = vld [vmem:[#allocation8 + $0x18] sm:$0xff]   ;;  %v991_v47 = vld [vmem:[#allocation8 + $0x20] sm:$0xff]   ;;  %v993_v49 = vld [vmem:[#allocation8 + $0x28] sm:$0xff]   ;;  %v184_v53 = vunpack.c.0.s8 %v183_v51  ;;  %p1121_p13 = scmp.lt.s32.totalorder %s789_s14, %s789_s14 }
  0x6c   :  { %414 = vmatprep.subr.bf16.mxu1 %v946_v14  ;;  %v804_v55 = vld.sshfl [vmem:[%s1328_s2] sm:$0x11 pattern:$0x75316420]  ;;  %v994_v12 = vld [vmem:[#allocation8 + $0x70] sm:$0xff]   ;;  %v996_v14 = vld [vmem:[#allocation8 + $0x78] sm:$0xff]  }
  0x6d   :  { %v187_v56 = vsub.s32 %v184_v53, %v186_v54  ;;  %v181_v57 = vcombine.high %v804_v55, %v804_v55  ;;  %v995_v13 = vld [vmem:[#allocation8 + $0x30] sm:$0xff]   ;;  %v1001_v38 = vld [vmem:[#allocation10 + $0x18] sm:$0xff]   ;;  %v1002_v39 = vld [vmem:[#allocation10 + $0x20] sm:$0xff]  }
  0x6e   :  { %866 = vmatpush3.bf16.msra.mxu0 %v985_v41  ;;  %v1003_v40 = vld [vmem:[#allocation10 + $0x28] sm:$0xff]   ;;  %v1004_v41 = vld [vmem:[#allocation10 + $0x30] sm:$0xff]  }
  0x6f   :  { %415 = vmatpush1.bf16.msra.mxu1 %v948_v15  ;;  %867 = vmatprep.subr.bf16.mxu0 %v986_v42  ;;  %v188_v58 = vrot.slane %v804_v55, %v187_v56  ;;  %v195_v59 = vrot.slane %v181_v57, %v187_v56  ;;  %v997_v15 = vld [vmem:[#allocation8 + $0x38] sm:$0xff]   ;;  %v854_v54 = vld [vmem:[%s1334_s8] ss:$0 sm:$0xff] }
  0x70   :  { %416 = vmatprep.subr.bf16.mxu1 %v949_v16  ;;  %v1157_v16 = vmov 0.0   ;;  %v1005_v42 = vld [vmem:[#allocation10 + $0x38] sm:$0xff]  }
  0x71   :  { %v197_v60 = vpack.i.b16 %v188_v58, %v188_v58  ;;  %v204_v62 = vpack.i.b16 %v195_v59, %v195_v59 }
  0x72   :  { %868 = vmatpush3.bf16.msra.mxu0 %v987_v43  ;;  %v660_v43 = vld [vmem:[%s1332_s6] sm:$0x1]  ;;  %s1116_s6 = scalar_lea.vmem %s789_s14, 32 }
  0x73   :  { %417 = vmatpush1.bf16.msra.mxu1 %v951_v17  ;;  %869 = vmatprep.subr.bf16.mxu0 %v988_v44  ;;  %v202_v63 = vrot.slane %v197_v60, %v1293_v61  ;;  %v209_v2 = vrot.slane %v204_v62, %v1293_v61  ;;  %v837_v17 = vld.sshfl [vmem:[%s1330_s4] sm:$0x11 pattern:$0x75316420]  ;;  %v662_v44 = vpack.i.b16 %v660_v43, %v660_v43  ;;  %p1117_p12 = scmp.ne.s32.totalorder %s789_s14, %s1116_s6  ;;  %p1122_p0 = scmp.lt.s32.totalorder %s1116_s6, %s1116_s6 }
  0x74   :  { %418 = vmatprep.subr.bf16.mxu1 %v952_v18  ;;  %v458_v18 = vcombine.high %v837_v17, %v837_v17 }
  0x75   :  { %p1123_p1 = por %p1122_p0, %p1121_p13 }
  0x76   :  { %870 = vmatpush3.bf16.msra.mxu0 %v989_v45 }
  0x77   :  { %419 = vmatpush1.bf16.msra.mxu1 %v954_v19  ;;  %871 = vmatprep.subr.bf16.mxu0 %v990_v46  ;;  %v465_v19 = vrot.slane %v837_v17, %v187_v56  ;;  %p1124_p2 = pnand %p1123_p1, %p1117_p12 }
  0x78   :  { %420 = vmatprep.subr.bf16.mxu1 %v955_v20  ;;  %v472_v20 = vrot.slane %v458_v18, %v187_v56 }
  0x7a   :  { %872 = vmatpush3.bf16.msra.mxu0 %v991_v47 }
  0x7b   :  { %421 = vmatpush1.bf16.msra.mxu1 %v957_v21  ;;  %873 = vmatprep.subr.bf16.mxu0 %v992_v48  ;;  %v474_v21 = vpack.i.b16 %v465_v19, %v465_v19  ;;  %v667_v48 = vrot.slane %v662_v44, %v1293_v61 }
  0x7c   :  { %422 = vmatprep.subr.bf16.mxu1 %v958_v22  ;;  %v481_v22 = vpack.i.b16 %v472_v20, %v472_v20 }
  0x7e   :  { %874 = vmatpush3.bf16.msra.mxu0 %v993_v49 }
  0x7f   :  { %423 = vmatpush1.bf16.msra.mxu1 %v960_v23  ;;  %875 = vmatprep.subr.bf16.mxu0 %v994_v12  ;;  %v479_v23 = vrot.slane %v474_v21, %v1293_v61 }
  0x80   :  { %424 = vmatprep.subr.bf16.mxu1 %v961_v24 }
  0x82   :  { %876 = vmatpush3.bf16.msra.mxu0 %v995_v13 }
  0x83   :  { %425 = vmatpush1.bf16.msra.mxu1 %v963_v25  ;;  %877 = vmatprep.subr.bf16.mxu0 %v996_v14  ;;  %v486_v25 = vrot.slane %v481_v22, %v1293_v61 }
  0x84   :  { %426 = vmatprep.subr.bf16.mxu1 %v964_v26 }
  0x86   :  { %878 = vmatpush3.bf16.msra.mxu0 %v997_v15 }
  0x87   :  { %427 = vmatpush1.bf16.msra.mxu1 %v966_v27  ;;  %894 = vmatprep.subr.bf16.mxu0 %v1157_v16 }
  0x88   :  { %428 = vmatprep.subr.bf16.mxu1 %v967_v28 }
  0x8b   :  { %429 = vmatpush1.bf16.msra.mxu1 %v969_v29 }
  0x8c   :  { %430 = vmatprep.subr.bf16.mxu1 %v970_v30 }
  0x8f   :  { %431 = vmatpush1.bf16.msra.mxu1 %v972_v31 }
  0x90   :  { %432 = vmatprep.subr.bf16.mxu1 %v973_v32 }
  0x93   :  { %433 = vmatpush1.bf16.msra.mxu1 %v975_v33 }
  0x94   :  { %434 = vmatprep.subr.bf16.mxu1 %v976_v34  ;;  %v998_v34 = vld [vmem:[#allocation10] sm:$0xff]  }
  0x97   :  { %435 = vmatpush1.bf16.msra.mxu1 %v978_v35 }
  0x98   :  { %436 = vmatprep.subr.bf16.mxu1 %v979_v36  ;;  %v999_v36 = vld [vmem:[#allocation10 + $0x8] sm:$0xff]  }
  0x9b   :  { %437 = vmatpush1.bf16.msra.mxu1 %v981_v37  ;;  %v1000_v37 = vld [vmem:[#allocation10 + $0x10] sm:$0xff]  }
 0x137   :  { %v163_v1 = vpop.f32.mrb[0].mxu0 }
 0x138   :  { %v170_v3 = vpack.c.bf16 %v163_v1, %v163_v1  ;;  %v165_v4 = vpop.f32.mrb[1].mxu0 }
 0x139   :  { %v171_v5 = vpack.c.bf16 %v165_v4, %v165_v4  ;;  %v167_v6 = vpop.f32.mrb[2].mxu0 }
 0x13a   :  { %v210_v7 = vadd.bf16 %v202_v63, %v170_v3  ;;  %v168_v8 = vpop.f32.mrb[3].mxu0 }
 0x13b   :  { %v211_v9 = vadd.bf16 %v209_v2, %v171_v5 }
 0x13c   :  { %v212_v11 = vmax.bf16 %v1155_v0, %v210_v7 }
 0x13d   :  { %v213_v10 = vmax.bf16 %v1155_v0, %v211_v9 }
 0x13f   :  { %438 = vmatprep.mubr.bf16.mxu1 %v213_v10 }
 0x140   :  { %439 = vmatmul.mubr.bf16.vlgmr.msra.gmra.mrb[0].mxu1 %v212_v11 }
 0x213   :  { %v440_v24 = vpop.f32.mrb[0].mxu1 }
 0x214   :  { %v447_v26 = vpack.c.bf16 %v440_v24, %v440_v24  ;;  %v442_v27 = vpop.f32.mrb[1].mxu1 }
 0x215   :  { %v448_v28 = vpack.c.bf16 %v442_v27, %v442_v27  ;;  %v444_v29 = vpop.f32.mrb[2].mxu1 }
 0x216   :  { %v487_v30 = vadd.bf16 %v479_v23, %v447_v26  ;;  %v445_v31 = vpop.f32.mrb[3].mxu1 }
 0x217   :  { %v488_v32 = vadd.bf16 %v486_v25, %v448_v28 }
 0x218   :  { %v489_v35 = vmax.bf16 %v1155_v0, %v487_v30 }
 0x219   :  { %v490_v33 = vmax.bf16 %v1155_v0, %v488_v32 }
 0x21b   :  { %651 = vmatprep.mubr.bf16.mxu0 %v490_v33 }
 0x21c   :  { %652 = vmatmul.mubr.bf16.vlgmr.msra.gmra.mrb[4].mxu0 %v489_v35 }
 0x21d   :  { %895 = vmatpush3.bf16.msra.mxu0 %v998_v34  ;;  %910 = vmatprep.mubr.msk.bf16.mxu0 %vm1158_vm1, %v1157_v16 }
 0x21e   :  { %896 = vmatprep.subr.bf16.mxu0 %v1157_v16 }
 0x221   :  { %897 = vmatpush3.bf16.msra.mxu0 %v999_v36 }
 0x222   :  { %898 = vmatprep.subr.bf16.mxu0 %v1157_v16 }
 0x225   :  { %899 = vmatpush3.bf16.msra.mxu0 %v1000_v37 }
 0x226   :  { %900 = vmatprep.subr.bf16.mxu0 %v1157_v16 }
 0x229   :  { %901 = vmatpush3.bf16.msra.mxu0 %v1001_v38 }
 0x22a   :  { %902 = vmatprep.subr.bf16.mxu0 %v1157_v16 }
 0x22d   :  { %903 = vmatpush3.bf16.msra.mxu0 %v1002_v39 }
 0x22e   :  { %904 = vmatprep.subr.bf16.mxu0 %v1157_v16 }
 0x231   :  { %905 = vmatpush3.bf16.msra.mxu0 %v1003_v40 }
 0x232   :  { %906 = vmatprep.subr.bf16.mxu0 %v1157_v16 }
 0x235   :  { %907 = vmatpush3.bf16.msra.mxu0 %v1004_v41 }
 0x236   :  { %908 = vmatprep.subr.bf16.mxu0 %v1157_v16 }
 0x239   :  { %909 = vmatpush3.bf16.msra.mxu0 %v1005_v42 }
 0x2ef   :  { %v879_v45 = vpop.f32.mrb[4].mxu0 }
 0x2f0   :  { %v880_v46 = vpop.f32.mrb[5].mxu0 }
 0x2f1   :  { %v881_v47 = vadd.f32 %v880_v46, %v879_v45  ;;  %v882_v49 = vpop.f32.mrb[6].mxu0 }
 0x2f2   :  { %v883_v50 = vpop.f32.mrb[7].mxu0 }
 0x2f3   :  { %v659_v51 = vpack.c.bf16 %v881_v47, %v881_v47 }
 0x2f5   :  { %v668_v52 = vadd.bf16 %v667_v48, %v659_v51 }
 0x2f7   :  { %v669_v53 = vmax.bf16 %v1155_v0, %v668_v52 }
 0x2f9   :  { %911 = vmatmul.mubr.bf16.vlgmr.msra.gmra.mrb[8].mxu0 %v669_v53 }
 0x3cc   :  { %v775_v55 = vpop.f32.mrb[8].mxu0 }
 0x3cd   :  { %v776_v56 = vadd.f32 %v854_v54, %v775_v55  ;;  %v912_v57 = vpop.f32.mrb[9].mxu0 }
 0x3ce   :  { %v778_v58 = vpop.f32.mrb[10].mxu0 }
 0x3cf   :  { %781 = vst [vmem:[#allocation11] sm:$0x3] %v776_v56  ;;  %v913_v59 = vpop.f32.mrb[11].mxu0 }
 0x3d0   :  { %1127 = shalt.err (!%p1124_p2)
}
 0x3d1   :  { %s1128_s8 = scalar_lea.hbm %s1335_s9, 32 }
 0x3d2   :  { %p1129_p3 = scmp.ne.s32.totalorder %s1335_s9, %s1128_s8  ;;  %p1132_p4 = scmp.lt.u32.totalorder %s1128_s8, %s1335_s9 }
 0x3d4   :  { %p1134_p5 = pnand %p1132_p4, %p1129_p3 }
 0x3d6   :  { %1137 = shalt.err (!%p1134_p5)
}
 0x3d7   :  { %791 = dma.vmem_to_hbm [thread:$0]  %s789_s14, 32, %s1335_s9, [#allocation4]  }
 0x3d8   :  { %1144 = dma.done.wait [#allocation4], 32  }
 0x3d9   :  { %1145 = vsyncadd [#allocation4], 4294967264 }
 0x3da   :  { %795 = vsyncpa [#allocation3], 1 }
 0x3db   :  { %796 = vsyncpa [#allocation6], 1 }
 0x3dc   :  { %797 = vsyncpa [#allocation9], 1 }
 0x3dd   :  { %798 = vsyncpa [#allocation4], 1 }

</bundles_post_ra>
